<compile_context>
chip_gen: v5e
topology: v5e:2x2
jax: 0.10.0
libtpu: 0.0.40
codegen_flags: <defaults>
</compile_context>

<pallas_src>
import jax
import jax.numpy as jnp
from jax.experimental import pallas as pl
from jax.experimental.pallas import tpu as pltpu

EPS = 1e-5
EMBED = 128
NUM_HEADS = 8
HEAD_DIM = EMBED // NUM_HEADS  # 16
LANE = 128


def _round_up(x, m):
    return (x + m - 1) // m * m


# ----------------------------------- kernel -----------------------------------
def multimodal_kernel(
    text_ref,    # [TB, Dt_pad]  bf16 mean-pooled text features (lane-padded)
    img_ref,     # [TB, Di_pad]  bf16 flattened image features (lane-padded)
    wt_ref,      # [Dt_pad, 128] bf16 text Linear (+BN fold)
    wi1_ref,     # [Di_pad, 256] bf16 image Linear1 (+BN fold)
    bi1_ref,     # [1, 256]      f32
    wi2_ref,     # [256, 128]    bf16 image Linear2 (+BN fold)
    wqkv_ref,    # [128, 384]    bf16 fused q|k|v in_proj weight
    bqkv_ref,    # [1, 384]      f32
    hh_ref,      # [128, 128]    bf16 per-head block indicator * 1/sqrt(head_dim)
    wof1_ref,    # [128, 128]    bf16 out_proj folded into fc_fusion1
    wf2_ref,     # [128, 128]    bf16
    wc_ref,      # [128, 128]    bf16 classifier, lane-padded
    bias_ref,    # [8, 128] f32 rows: bt, bi2, bof1, bf2, ln_g, ln_b, bc(padded), 0
    out_ref,     # [TB, 128] f32 lane-padded logits
):
    bias = bias_ref[...]
    bt, bi2, bof1 = bias[0:1, :], bias[1:2, :], bias[2:3, :]
    bf2, lng, lnb, bc = bias[3:4, :], bias[4:5, :], bias[5:6, :], bias[6:7, :]

    # ---- text path: (sequence mean done in wrapper) Linear + BN fold + ReLU ----
    t = jnp.maximum(
        jnp.dot(text_ref[...], wt_ref[...], preferred_element_type=jnp.float32) + bt, 0.0)

    # ---- image path: Linear+BN+ReLU -> Linear+BN+ReLU (BN folded) ----
    x = jnp.maximum(
        jnp.dot(img_ref[...], wi1_ref[...], preferred_element_type=jnp.float32)
        + bi1_ref[...], 0.0)
    im = jnp.maximum(
        jnp.dot(x.astype(jnp.bfloat16), wi2_ref[...],
                preferred_element_type=jnp.float32) + bi2, 0.0)

    # ---- multi-head self-attention over the length-2 sequence (text token, image token) ----
    # no sublane concats: two [TB,128]x[128,384] matmuls instead of one [2TB,128]x[128,384]
    t_bf = t.astype(jnp.bfloat16)
    i_bf = im.astype(jnp.bfloat16)
    qkv_t = jnp.dot(t_bf, wqkv_ref[...], preferred_element_type=jnp.float32) + bqkv_ref[...]
    qkv_i = jnp.dot(i_bf, wqkv_ref[...], preferred_element_type=jnp.float32) + bqkv_ref[...]
    q_t, k_t, v_t = qkv_t[:, 0:EMBED], qkv_t[:, EMBED:2 * EMBED], qkv_t[:, 2 * EMBED:]
    q_i, k_i, v_i = qkv_i[:, 0:EMBED], qkv_i[:, EMBED:2 * EMBED], qkv_i[:, 2 * EMBED:]

    # per-head score difference (s_q,text - s_q,img), broadcast back to 128 lanes by the
    # scaled block-diagonal matrix hh; softmax over 2 keys == sigmoid of the difference.
    k_diff = k_t - k_i
    d_t = jnp.dot((q_t * k_diff).astype(jnp.bfloat16), hh_ref[...],
                  preferred_element_type=jnp.float32)
    d_i = jnp.dot((q_i * k_diff).astype(jnp.bfloat16), hh_ref[...],
                  preferred_element_type=jnp.float32)
    # mean over the 2 query tokens folded into the mixing weight
    w = 0.5 * (jax.nn.sigmoid(d_t) + jax.nn.sigmoid(d_i))
    attn = v_i + w * (v_t - v_i)                                            # [TB, 128]

    # ---- fusion MLP (out_proj folded into fc_fusion1), residual, LayerNorm, classifier ----
    f1 = jnp.maximum(
        jnp.dot(attn.astype(jnp.bfloat16), wof1_ref[...],
                preferred_element_type=jnp.float32) + bof1, 0.0)
    f2 = jnp.dot(f1.astype(jnp.bfloat16), wf2_ref[...],
                 preferred_element_type=jnp.float32) + bf2
    res = f2 + f1
    mu = jnp.mean(res, axis=-1, keepdims=True)
    var = jnp.mean((res - mu) ** 2, axis=-1, keepdims=True)
    normed = (res - mu) * jax.lax.rsqrt(var + EPS) * lng + lnb
    out_ref[...] = jnp.dot(normed.astype(jnp.bfloat16), wc_ref[...],
                           preferred_element_type=jnp.float32) + bc


# ------------------------ host-side parameter preparation ------------------------
_WEIGHT_ORDER = ("wt", "wi1", "bi1", "wi2", "wqkv", "bqkv",
                 "hh", "wof1", "wf2", "wc", "bias")


def prepare_params(p, text_dim, image_dim, num_classes):
    """Fold eval-mode BN into Linears, fuse QKV, fold out_proj into fc_fusion1, pad lane dims,
    and cast all matmul weights to bf16 (biases/LN params kept f32 in one packed slab)."""
    bf16 = jnp.bfloat16

    # text Linear + BN fold
    st = p["bnt_g"] / jnp.sqrt(p["bnt_v"] + EPS)
    wt = p["wt"] * st
    bt = (p["bt"] - p["bnt_m"]) * st + p["bnt_b"]
    dt_pad = _round_up(text_dim, LANE)
    wt = jnp.pad(wt, ((0, dt_pad - text_dim), (0, 0)))

    # image Linear1 + BN fold (pad input dim to a lane multiple)
    s1 = p["bn1_g"] / jnp.sqrt(p["bn1_v"] + EPS)
    wi1 = p["wi1"] * s1
    bi1 = (p["bi1"] - p["bn1_m"]) * s1 + p["bn1_b"]
    di_pad = _round_up(image_dim, LANE)
    wi1 = jnp.pad(wi1, ((0, di_pad - image_dim), (0, 0)))

    # image Linear2 + BN fold
    s2 = p["bn2_g"] / jnp.sqrt(p["bn2_v"] + EPS)
    wi2 = p["wi2"] * s2
    bi2 = (p["bi2"] - p["bn2_m"]) * s2 + p["bn2_b"]

    # fused q|k|v in_proj
    wqkv = jnp.concatenate([p["wq"], p["wk"], p["wv"]], axis=1)  # [128, 384]
    bqkv = jnp.concatenate([p["bq"], p["bk"], p["bv"]], axis=1)  # [1, 384]

    # per-head block-diagonal broadcast matrix, pre-scaled by 1/sqrt(head_dim)
    head_ids = jnp.arange(EMBED) // HEAD_DIM
    hh = (head_ids[:, None] == head_ids[None, :]).astype(jnp.float32) / jnp.sqrt(
        float(HEAD_DIM))

    # attention out_proj folded into fc_fusion1 (fusion feeds wf1 with no nonlinearity between)
    wof1 = p["wo"] @ p["wf1"]
    bof1 = p["bo"] @ p["wf1"] + p["bf1"]

    # lane-padded classifier
    wc = jnp.pad(p["wc"], ((0, 0), (0, LANE - num_classes)))
    bc = jnp.pad(p["bc"], ((0, 0), (0, LANE - num_classes)))

    # pack remaining 128-wide f32 vectors into one slab (one DMA instead of seven)
    bias = jnp.concatenate(
        [bt, bi2, bof1, p["bf2"], p["lng"], p["lnb"], bc,
         jnp.zeros((1, EMBED), jnp.float32)], axis=0)            # [8, 128]

    return {
        "wt": wt.astype(bf16), "wi1": wi1.astype(bf16), "bi1": bi1,
        "wi2": wi2.astype(bf16), "wqkv": wqkv.astype(bf16), "bqkv": bqkv,
        "hh": hh.astype(bf16), "wof1": wof1.astype(bf16),
        "wf2": p["wf2"].astype(bf16), "wc": wc.astype(bf16), "bias": bias,
    }


# ----------------------------------- wrapper -----------------------------------
def multimodal_forward(prep, text_hidden, image_features, num_classes):
    B, S, Dt = text_hidden.shape
    Di = image_features.shape[1]
    dt_pad = prep["wt"].shape[0]
    di_pad = prep["wi1"].shape[0]

    # batch-adaptive tile: f32/bf16 only need sublane multiples of 8; cap at 256 rows
    # (big tiles amortize pipeline overhead on v6e; >256 rows of batch give >=2 grid steps
    #  so v7x's second TensorCore participates via dimension_semantics="parallel").
    TB = min(_round_up(max(B, 1), 8), 256)
    B_pad = _round_up(B, TB)

    # sequence mean-pool in the wrapper (undoes the previous S-times replication of wt),
    # pad lane dims to 128 multiples, batch only to a multiple of TB, cast to bf16.
    txt = text_hidden.mean(axis=1)                               # [B, Dt]
    txt = jnp.pad(txt, ((0, B_pad - B), (0, dt_pad - Dt))).astype(jnp.bfloat16)
    img = jnp.pad(image_features,
                  ((0, B_pad - B), (0, di_pad - Di))).astype(jnp.bfloat16)

    weights = [prep[k] for k in _WEIGHT_ORDER]

    row_map = lambda i: (i, 0)
    const_map = lambda i: (0, 0)

    in_specs = (
        [pl.BlockSpec((TB, dt_pad), row_map),
         pl.BlockSpec((TB, di_pad), row_map)]
        + [pl.BlockSpec(w.shape, const_map) for w in weights]
    )

    flops = 2 * B_pad * (
        dt_pad * EMBED + di_pad * 256 + 256 * EMBED
        + 2 * EMBED * 3 * EMBED      # two QKV matmuls
        + 2 * EMBED * EMBED          # two head-score broadcast matmuls
        + 3 * EMBED * EMBED          # wof1, wf2, classifier
    )
    transcendentals = 2 * B_pad * EMBED + B_pad     # sigmoids + layernorm rsqrt

    def _nbytes(a):
        return a.size * a.dtype.itemsize
    bytes_accessed = (_nbytes(txt) + _nbytes(img)
                      + sum(_nbytes(w) for w in weights) + B_pad * LANE * 4)

    out = pl.pallas_call(
        multimodal_kernel,
        out_shape=jax.ShapeDtypeStruct((B_pad, LANE), jnp.float32),
        grid=(B_pad // TB,),
        in_specs=in_specs,
        out_specs=pl.BlockSpec((TB, LANE), row_map),
        compiler_params=pltpu.CompilerParams(
            dimension_semantics=("parallel",),
            vmem_limit_bytes=48 * 1024 * 1024,   # safe under v7x's 64 MiB physical VMEM
        ),
        cost_estimate=pl.CostEstimate(
            flops=flops, transcendentals=transcendentals, bytes_accessed=bytes_accessed),
    )(txt, img, *weights)

    return out[:B, :num_classes]


# ---------------- pure-JAX reference (mirrors the PyTorch forward, eval mode) ----------------
def reference(params, text_hidden, image_features):
    p = params
    txt = text_hidden.mean(axis=1)
    t = txt @ p["wt"] + p["bt"]
    t = (t - p["bnt_m"]) / jnp.sqrt(p["bnt_v"] + EPS) * p["bnt_g"] + p["bnt_b"]
    t = jax.nn.relu(t)
    x = image_features @ p["wi1"] + p["bi1"]
    x = (x - p["bn1_m"]) / jnp.sqrt(p["bn1_v"] + EPS) * p["bn1_g"] + p["bn1_b"]
    x = jax.nn.relu(x)
    x = x @ p["wi2"] + p["bi2"]
    x = (x - p["bn2_m"]) / jnp.sqrt(p["bn2_v"] + EPS) * p["bn2_g"] + p["bn2_b"]
    im = jax.nn.relu(x)
    seq = jnp.stack([t, im], axis=0)                             # [2, B, 128] (L, N, E)
    q = seq @ p["wq"] + p["bq"]
    k = seq @ p["wk"] + p["bk"]
    v = seq @ p["wv"] + p["bv"]
    B = t.shape[0]
    split = lambda z: z.reshape(2, B, NUM_HEADS, HEAD_DIM).transpose(1, 2, 0, 3)
    qh, kh, vh = split(q), split(k), split(v)                    # [B, H, 2, 16]
    scores = jnp.einsum("bhqd,bhkd->bhqk", qh, kh) / jnp.sqrt(float(HEAD_DIM))
    attn = jax.nn.softmax(scores, axis=-1)
    oh = jnp.einsum("bhqk,bhkd->bhqd", attn, vh)
    o = oh.transpose(2, 0, 1, 3).reshape(2, B, EMBED) @ p["wo"] + p["bo"]
    fusion = o.mean(axis=0)
    f1 = jax.nn.relu(fusion @ p["wf1"] + p["bf1"])
    f2 = f1 @ p["wf2"] + p["bf2"]
    res = f2 + f1
    mu = res.mean(-1, keepdims=True)
    var = ((res - mu) ** 2).mean(-1, keepdims=True)
    normed = (res - mu) / jnp.sqrt(var + EPS) * p["lng"] + p["lnb"]
    return normed @ p["wc"] + p["bc"]


def init_params(key, text_dim, image_dim, num_classes):
    keys = iter(jax.random.split(key, 64))
    n = lambda shape, s=0.05: (s * jax.random.normal(next(keys), shape)).astype(jnp.float32)
    u = lambda shape: jax.random.uniform(next(keys), shape, minval=0.5, maxval=1.5).astype(jnp.float32)
    return {
        "wt": n((text_dim, EMBED)), "bt": n((1, EMBED)),
        "bnt_g": u((1, EMBED)), "bnt_b": n((1, EMBED)), "bnt_m": n((1, EMBED)), "bnt_v": u((1, EMBED)),
        "wi1": n((image_dim, 256)), "bi1": n((1, 256)),
        "bn1_g": u((1, 256)), "bn1_b": n((1, 256)), "bn1_m": n((1, 256)), "bn1_v": u((1, 256)),
        "wi2": n((256, EMBED)), "bi2": n((1, EMBED)),
        "bn2_g": u((1, EMBED)), "bn2_b": n((1, EMBED)), "bn2_m": n((1, EMBED)), "bn2_v": u((1, EMBED)),
        "wq": n((EMBED, EMBED)), "bq": n((1, EMBED)),
        "wk": n((EMBED, EMBED)), "bk": n((1, EMBED)),
        "wv": n((EMBED, EMBED)), "bv": n((1, EMBED)),
        "wo": n((EMBED, EMBED)), "bo": n((1, EMBED)),
        "wf1": n((EMBED, EMBED)), "bf1": n((1, EMBED)),
        "wf2": n((EMBED, EMBED)), "bf2": n((1, EMBED)),
        "lng": u((1, EMBED)), "lnb": n((1, EMBED)),
        "wc": n((EMBED, num_classes)), "bc": n((1, num_classes)),
    }


if __name__ == "__main__":
    B, S = 4, 8
    TEXT_DIM, IMAGE_DIM, NUM_CLASSES = 32, 64, 6

    key = jax.random.PRNGKey(0)
    kp, kt, ki = jax.random.split(key, 3)
    params = init_params(kp, TEXT_DIM, IMAGE_DIM, NUM_CLASSES)

    text_hidden = jax.random.normal(kt, (B, S, TEXT_DIM), dtype=jnp.float32)   # BERT last_hidden_state surrogate
    image_features = jax.random.normal(ki, (B, IMAGE_DIM), dtype=jnp.float32)  # already flattened (B, -1)

    prep = prepare_params(params, TEXT_DIM, IMAGE_DIM, NUM_CLASSES)
    out = multimodal_forward(prep, text_hidden, image_features, NUM_CLASSES)
    out = jax.block_until_ready(out)

    ref = reference(params, text_hidden, image_features)
    assert out.shape == (B, NUM_CLASSES)
    # bf16 MXU operands (f32 accumulation) -> looser tolerance than the all-f32 version.
    assert jnp.max(jnp.abs(out - ref)) < 1e-1, (out, ref)
    print("KERNEL_OK")
</pallas_src>

<mosaic_0001>
module attributes {stable_mosaic.version = 11 : i64} {
  func.func @multimodal_kernel(%arg0: i32, %arg1: memref<8x128xbf16, #tpu.memory_space<vmem>>, %arg2: memref<8x128xbf16, #tpu.memory_space<vmem>>, %arg3: memref<128x128xbf16, #tpu.memory_space<vmem>>, %arg4: memref<128x256xbf16, #tpu.memory_space<vmem>>, %arg5: memref<1x256xf32, #tpu.memory_space<vmem>>, %arg6: memref<256x128xbf16, #tpu.memory_space<vmem>>, %arg7: memref<128x384xbf16, #tpu.memory_space<vmem>>, %arg8: memref<1x384xf32, #tpu.memory_space<vmem>>, %arg9: memref<128x128xbf16, #tpu.memory_space<vmem>>, %arg10: memref<128x128xbf16, #tpu.memory_space<vmem>>, %arg11: memref<128x128xbf16, #tpu.memory_space<vmem>>, %arg12: memref<128x128xbf16, #tpu.memory_space<vmem>>, %arg13: memref<8x128xf32, #tpu.memory_space<vmem>>, %arg14: memref<8x128xf32, #tpu.memory_space<vmem>>) attributes {dimension_semantics = [#tpu.dimension_semantics<parallel>], iteration_bounds = array<i64: 1>, scalar_prefetch = 0 : i64, scratch_operands = 0 : i64, tpu.core_type = #tpu.core_type<tc>, window_params = [{transform_indices = @transform_0, window_bounds = array<i64: 8, 128>}, {transform_indices = @transform_1, window_bounds = array<i64: 8, 128>}, {pipeline_mode = #tpu.pipeline_mode<synchronous>, transform_indices = @transform_2, window_bounds = array<i64: 128, 128>}, {pipeline_mode = #tpu.pipeline_mode<synchronous>, transform_indices = @transform_3, window_bounds = array<i64: 128, 256>}, {pipeline_mode = #tpu.pipeline_mode<synchronous>, transform_indices = @transform_4, window_bounds = array<i64: 1, 256>}, {pipeline_mode = #tpu.pipeline_mode<synchronous>, transform_indices = @transform_5, window_bounds = array<i64: 256, 128>}, {pipeline_mode = #tpu.pipeline_mode<synchronous>, transform_indices = @transform_6, window_bounds = array<i64: 128, 384>}, {pipeline_mode = #tpu.pipeline_mode<synchronous>, transform_indices = @transform_7, window_bounds = array<i64: 1, 384>}, {pipeline_mode = #tpu.pipeline_mode<synchronous>, transform_indices = @transform_8, window_bounds = array<i64: 128, 128>}, {pipeline_mode = #tpu.pipeline_mode<synchronous>, transform_indices = @transform_9, window_bounds = array<i64: 128, 128>}, {pipeline_mode = #tpu.pipeline_mode<synchronous>, transform_indices = @transform_10, window_bounds = array<i64: 128, 128>}, {pipeline_mode = #tpu.pipeline_mode<synchronous>, transform_indices = @transform_11, window_bounds = array<i64: 128, 128>}, {pipeline_mode = #tpu.pipeline_mode<synchronous>, transform_indices = @transform_12, window_bounds = array<i64: 8, 128>}, {transform_indices = @transform_13, window_bounds = array<i64: 8, 128>}]} {
    %c0 = arith.constant 0 : index
    %c0_0 = arith.constant 0 : index
    %0 = vector.load %arg13[%c0, %c0_0] : memref<8x128xf32, #tpu.memory_space<vmem>>, vector<8x128xf32>
    %1 = vector.extract_strided_slice %0 {offsets = [0, 0], sizes = [1, 128], strides = [1, 1]} : vector<8x128xf32> to vector<1x128xf32>
    %2 = vector.extract_strided_slice %0 {offsets = [1, 0], sizes = [1, 128], strides = [1, 1]} : vector<8x128xf32> to vector<1x128xf32>
    %3 = vector.extract_strided_slice %0 {offsets = [2, 0], sizes = [1, 128], strides = [1, 1]} : vector<8x128xf32> to vector<1x128xf32>
    %4 = vector.extract_strided_slice %0 {offsets = [3, 0], sizes = [1, 128], strides = [1, 1]} : vector<8x128xf32> to vector<1x128xf32>
    %5 = vector.extract_strided_slice %0 {offsets = [4, 0], sizes = [1, 128], strides = [1, 1]} : vector<8x128xf32> to vector<1x128xf32>
    %6 = vector.extract_strided_slice %0 {offsets = [5, 0], sizes = [1, 128], strides = [1, 1]} : vector<8x128xf32> to vector<1x128xf32>
    %7 = vector.extract_strided_slice %0 {offsets = [6, 0], sizes = [1, 128], strides = [1, 1]} : vector<8x128xf32> to vector<1x128xf32>
    %c0_1 = arith.constant 0 : index
    %c0_2 = arith.constant 0 : index
    %8 = vector.load %arg1[%c0_1, %c0_2] : memref<8x128xbf16, #tpu.memory_space<vmem>>, vector<8x128xbf16>
    %c0_3 = arith.constant 0 : index
    %c0_4 = arith.constant 0 : index
    %9 = vector.load %arg3[%c0_3, %c0_4] : memref<128x128xbf16, #tpu.memory_space<vmem>>, vector<128x128xbf16>
    %cst = arith.constant dense<0.000000e+00> : vector<8x128xf32>
    %10 = tpu.matmul %8, %9, %cst {dimension_numbers = #tpu.dot_dimension_numbers<[1], [0], [0], [1], [0, 0, 1, 1], [], []>} : vector<8x128xbf16>, vector<128x128xbf16>, vector<8x128xf32> -> vector<8x128xf32>
    %11 = vector.broadcast %1 : vector<1x128xf32> to vector<8x128xf32>
    %12 = arith.addf %10, %11 : vector<8x128xf32>
    %cst_5 = arith.constant 0.000000e+00 : f32
    %13 = vector.broadcast %cst_5 : f32 to vector<8x128xf32>
    %14 = arith.maximumf %12, %13 : vector<8x128xf32>
    %c0_6 = arith.constant 0 : index
    %c0_7 = arith.constant 0 : index
    %15 = vector.load %arg2[%c0_6, %c0_7] : memref<8x128xbf16, #tpu.memory_space<vmem>>, vector<8x128xbf16>
    %c0_8 = arith.constant 0 : index
    %c0_9 = arith.constant 0 : index
    %16 = vector.load %arg4[%c0_8, %c0_9] : memref<128x256xbf16, #tpu.memory_space<vmem>>, vector<128x256xbf16>
    %cst_10 = arith.constant dense<0.000000e+00> : vector<8x256xf32>
    %17 = tpu.matmul %15, %16, %cst_10 {dimension_numbers = #tpu.dot_dimension_numbers<[1], [0], [0], [1], [0, 0, 1, 1], [], []>} : vector<8x128xbf16>, vector<128x256xbf16>, vector<8x256xf32> -> vector<8x256xf32>
    %c0_11 = arith.constant 0 : index
    %c0_12 = arith.constant 0 : index
    %18 = vector.load %arg5[%c0_11, %c0_12] : memref<1x256xf32, #tpu.memory_space<vmem>>, vector<1x256xf32>
    %19 = vector.broadcast %18 : vector<1x256xf32> to vector<8x256xf32>
    %20 = arith.addf %17, %19 : vector<8x256xf32>
    %cst_13 = arith.constant 0.000000e+00 : f32
    %21 = vector.broadcast %cst_13 : f32 to vector<8x256xf32>
    %22 = arith.maximumf %20, %21 : vector<8x256xf32>
    %23 = arith.truncf %22 : vector<8x256xf32> to vector<8x256xbf16>
    %c0_14 = arith.constant 0 : index
    %c0_15 = arith.constant 0 : index
    %24 = vector.load %arg6[%c0_14, %c0_15] : memref<256x128xbf16, #tpu.memory_space<vmem>>, vector<256x128xbf16>
    %cst_16 = arith.constant dense<0.000000e+00> : vector<8x128xf32>
    %25 = tpu.matmul %23, %24, %cst_16 {dimension_numbers = #tpu.dot_dimension_numbers<[1], [0], [0], [1], [0, 0, 1, 1], [], []>} : vector<8x256xbf16>, vector<256x128xbf16>, vector<8x128xf32> -> vector<8x128xf32>
    %26 = vector.broadcast %2 : vector<1x128xf32> to vector<8x128xf32>
    %27 = arith.addf %25, %26 : vector<8x128xf32>
    %cst_17 = arith.constant 0.000000e+00 : f32
    %28 = vector.broadcast %cst_17 : f32 to vector<8x128xf32>
    %29 = arith.maximumf %27, %28 : vector<8x128xf32>
    %30 = arith.truncf %14 : vector<8x128xf32> to vector<8x128xbf16>
    %31 = arith.truncf %29 : vector<8x128xf32> to vector<8x128xbf16>
    %c0_18 = arith.constant 0 : index
    %c0_19 = arith.constant 0 : index
    %32 = vector.load %arg7[%c0_18, %c0_19] : memref<128x384xbf16, #tpu.memory_space<vmem>>, vector<128x384xbf16>
    %cst_20 = arith.constant dense<0.000000e+00> : vector<8x384xf32>
    %33 = tpu.matmul %30, %32, %cst_20 {dimension_numbers = #tpu.dot_dimension_numbers<[1], [0], [0], [1], [0, 0, 1, 1], [], []>} : vector<8x128xbf16>, vector<128x384xbf16>, vector<8x384xf32> -> vector<8x384xf32>
    %c0_21 = arith.constant 0 : index
    %c0_22 = arith.constant 0 : index
    %34 = vector.load %arg8[%c0_21, %c0_22] : memref<1x384xf32, #tpu.memory_space<vmem>>, vector<1x384xf32>
    %35 = vector.broadcast %34 : vector<1x384xf32> to vector<8x384xf32>
    %36 = arith.addf %33, %35 : vector<8x384xf32>
    %c0_23 = arith.constant 0 : index
    %c0_24 = arith.constant 0 : index
    %37 = vector.load %arg7[%c0_23, %c0_24] : memref<128x384xbf16, #tpu.memory_space<vmem>>, vector<128x384xbf16>
    %cst_25 = arith.constant dense<0.000000e+00> : vector<8x384xf32>
    %38 = tpu.matmul %31, %37, %cst_25 {dimension_numbers = #tpu.dot_dimension_numbers<[1], [0], [0], [1], [0, 0, 1, 1], [], []>} : vector<8x128xbf16>, vector<128x384xbf16>, vector<8x384xf32> -> vector<8x384xf32>
    %c0_26 = arith.constant 0 : index
    %c0_27 = arith.constant 0 : index
    %39 = vector.load %arg8[%c0_26, %c0_27] : memref<1x384xf32, #tpu.memory_space<vmem>>, vector<1x384xf32>
    %40 = vector.broadcast %39 : vector<1x384xf32> to vector<8x384xf32>
    %41 = arith.addf %38, %40 : vector<8x384xf32>
    %42 = vector.extract_strided_slice %36 {offsets = [0, 0], sizes = [8, 128], strides = [1, 1]} : vector<8x384xf32> to vector<8x128xf32>
    %43 = vector.extract_strided_slice %36 {offsets = [0, 128], sizes = [8, 128], strides = [1, 1]} : vector<8x384xf32> to vector<8x128xf32>
    %44 = vector.extract_strided_slice %36 {offsets = [0, 256], sizes = [8, 128], strides = [1, 1]} : vector<8x384xf32> to vector<8x128xf32>
    %45 = vector.extract_strided_slice %41 {offsets = [0, 0], sizes = [8, 128], strides = [1, 1]} : vector<8x384xf32> to vector<8x128xf32>
    %46 = vector.extract_strided_slice %41 {offsets = [0, 128], sizes = [8, 128], strides = [1, 1]} : vector<8x384xf32> to vector<8x128xf32>
    %47 = vector.extract_strided_slice %41 {offsets = [0, 256], sizes = [8, 128], strides = [1, 1]} : vector<8x384xf32> to vector<8x128xf32>
    %48 = arith.subf %43, %46 : vector<8x128xf32>
    %49 = arith.mulf %42, %48 : vector<8x128xf32>
    %50 = arith.truncf %49 : vector<8x128xf32> to vector<8x128xbf16>
    %c0_28 = arith.constant 0 : index
    %c0_29 = arith.constant 0 : index
    %51 = vector.load %arg9[%c0_28, %c0_29] : memref<128x128xbf16, #tpu.memory_space<vmem>>, vector<128x128xbf16>
    %cst_30 = arith.constant dense<0.000000e+00> : vector<8x128xf32>
    %52 = tpu.matmul %50, %51, %cst_30 {dimension_numbers = #tpu.dot_dimension_numbers<[1], [0], [0], [1], [0, 0, 1, 1], [], []>} : vector<8x128xbf16>, vector<128x128xbf16>, vector<8x128xf32> -> vector<8x128xf32>
    %53 = arith.mulf %45, %48 : vector<8x128xf32>
    %54 = arith.truncf %53 : vector<8x128xf32> to vector<8x128xbf16>
    %c0_31 = arith.constant 0 : index
    %c0_32 = arith.constant 0 : index
    %55 = vector.load %arg9[%c0_31, %c0_32] : memref<128x128xbf16, #tpu.memory_space<vmem>>, vector<128x128xbf16>
    %cst_33 = arith.constant dense<0.000000e+00> : vector<8x128xf32>
    %56 = tpu.matmul %54, %55, %cst_33 {dimension_numbers = #tpu.dot_dimension_numbers<[1], [0], [0], [1], [0, 0, 1, 1], [], []>} : vector<8x128xbf16>, vector<128x128xbf16>, vector<8x128xf32> -> vector<8x128xf32>
    %57 = arith.negf %52 : vector<8x128xf32>
    %58 = math.exp %57 : vector<8x128xf32>
    %cst_34 = arith.constant 1.000000e+00 : f32
    %59 = vector.broadcast %cst_34 : f32 to vector<8x128xf32>
    %60 = arith.addf %59, %58 : vector<8x128xf32>
    %61 = arith.divf %59, %60 : vector<8x128xf32>
    %62 = arith.negf %56 : vector<8x128xf32>
    %63 = math.exp %62 : vector<8x128xf32>
    %cst_35 = arith.constant 1.000000e+00 : f32
    %64 = vector.broadcast %cst_35 : f32 to vector<8x128xf32>
    %65 = arith.addf %64, %63 : vector<8x128xf32>
    %66 = arith.divf %64, %65 : vector<8x128xf32>
    %67 = arith.addf %61, %66 : vector<8x128xf32>
    %cst_36 = arith.constant 5.000000e-01 : f32
    %68 = vector.broadcast %cst_36 : f32 to vector<8x128xf32>
    %69 = arith.mulf %68, %67 : vector<8x128xf32>
    %70 = arith.subf %44, %47 : vector<8x128xf32>
    %71 = arith.mulf %69, %70 : vector<8x128xf32>
    %72 = arith.addf %47, %71 : vector<8x128xf32>
    %73 = arith.truncf %72 : vector<8x128xf32> to vector<8x128xbf16>
    %c0_37 = arith.constant 0 : index
    %c0_38 = arith.constant 0 : index
    %74 = vector.load %arg10[%c0_37, %c0_38] : memref<128x128xbf16, #tpu.memory_space<vmem>>, vector<128x128xbf16>
    %cst_39 = arith.constant dense<0.000000e+00> : vector<8x128xf32>
    %75 = tpu.matmul %73, %74, %cst_39 {dimension_numbers = #tpu.dot_dimension_numbers<[1], [0], [0], [1], [0, 0, 1, 1], [], []>} : vector<8x128xbf16>, vector<128x128xbf16>, vector<8x128xf32> -> vector<8x128xf32>
    %76 = vector.broadcast %3 : vector<1x128xf32> to vector<8x128xf32>
    %77 = arith.addf %75, %76 : vector<8x128xf32>
    %cst_40 = arith.constant 0.000000e+00 : f32
    %78 = vector.broadcast %cst_40 : f32 to vector<8x128xf32>
    %79 = arith.maximumf %77, %78 : vector<8x128xf32>
    %80 = arith.truncf %79 : vector<8x128xf32> to vector<8x128xbf16>
    %c0_41 = arith.constant 0 : index
    %c0_42 = arith.constant 0 : index
    %81 = vector.load %arg11[%c0_41, %c0_42] : memref<128x128xbf16, #tpu.memory_space<vmem>>, vector<128x128xbf16>
    %cst_43 = arith.constant dense<0.000000e+00> : vector<8x128xf32>
    %82 = tpu.matmul %80, %81, %cst_43 {dimension_numbers = #tpu.dot_dimension_numbers<[1], [0], [0], [1], [0, 0, 1, 1], [], []>} : vector<8x128xbf16>, vector<128x128xbf16>, vector<8x128xf32> -> vector<8x128xf32>
    %83 = vector.broadcast %4 : vector<1x128xf32> to vector<8x128xf32>
    %84 = arith.addf %82, %83 : vector<8x128xf32>
    %85 = arith.addf %84, %79 : vector<8x128xf32>
    %cst_44 = arith.constant dense<0.000000e+00> : vector<8xf32>
    %86 = vector.multi_reduction <add>, %85, %cst_44 [1] : vector<8x128xf32> to vector<8xf32>
    %87 = vector.shape_cast %86 : vector<8xf32> to vector<8x1xf32>
    %cst_45 = arith.constant 1.280000e+02 : f32
    %88 = vector.broadcast %cst_45 : f32 to vector<8x1xf32>
    %89 = arith.divf %87, %88 : vector<8x1xf32>
    %90 = vector.broadcast %89 : vector<8x1xf32> to vector<8x128xf32>
    %91 = arith.subf %85, %90 : vector<8x128xf32>
    %92 = arith.mulf %91, %91 : vector<8x128xf32>
    %cst_46 = arith.constant dense<0.000000e+00> : vector<8xf32>
    %93 = vector.multi_reduction <add>, %92, %cst_46 [1] : vector<8x128xf32> to vector<8xf32>
    %94 = vector.shape_cast %93 : vector<8xf32> to vector<8x1xf32>
    %cst_47 = arith.constant 1.280000e+02 : f32
    %95 = vector.broadcast %cst_47 : f32 to vector<8x1xf32>
    %96 = arith.divf %94, %95 : vector<8x1xf32>
    %97 = vector.broadcast %89 : vector<8x1xf32> to vector<8x128xf32>
    %98 = arith.subf %85, %97 : vector<8x128xf32>
    %cst_48 = arith.constant 9.99999974E-6 : f32
    %99 = vector.broadcast %cst_48 : f32 to vector<8x1xf32>
    %100 = arith.addf %96, %99 : vector<8x1xf32>
    %101 = math.rsqrt %100 : vector<8x1xf32>
    %102 = vector.broadcast %101 : vector<8x1xf32> to vector<8x128xf32>
    %103 = arith.mulf %98, %102 : vector<8x128xf32>
    %104 = vector.broadcast %5 : vector<1x128xf32> to vector<8x128xf32>
    %105 = arith.mulf %103, %104 : vector<8x128xf32>
    %106 = vector.broadcast %6 : vector<1x128xf32> to vector<8x128xf32>
    %107 = arith.addf %105, %106 : vector<8x128xf32>
    %108 = arith.truncf %107 : vector<8x128xf32> to vector<8x128xbf16>
    %c0_49 = arith.constant 0 : index
    %c0_50 = arith.constant 0 : index
    %109 = vector.load %arg12[%c0_49, %c0_50] : memref<128x128xbf16, #tpu.memory_space<vmem>>, vector<128x128xbf16>
    %cst_51 = arith.constant dense<0.000000e+00> : vector<8x128xf32>
    %110 = tpu.matmul %108, %109, %cst_51 {dimension_numbers = #tpu.dot_dimension_numbers<[1], [0], [0], [1], [0, 0, 1, 1], [], []>} : vector<8x128xbf16>, vector<128x128xbf16>, vector<8x128xf32> -> vector<8x128xf32>
    %111 = vector.broadcast %7 : vector<1x128xf32> to vector<8x128xf32>
    %112 = arith.addf %110, %111 : vector<8x128xf32>
    %c0_52 = arith.constant 0 : index
    %c0_53 = arith.constant 0 : index
    %113 = vector.load %arg14[%c0_52, %c0_53] : memref<8x128xf32, #tpu.memory_space<vmem>>, vector<8x128xf32>
    tpu.vector_store %arg14[%c0_52, %c0_53], %112 {strides = array<i32>} : memref<8x128xf32, #tpu.memory_space<vmem>>, vector<8x128xf32>,
    return
  }
  func.func @transform_0(%arg0: i32) -> (i32, i32) {
    %c0_i32 = arith.constant 0 : i32
    %c0_i32_0 = arith.constant 0 : i32
    return %arg0, %c0_i32 : i32, i32
  }
  func.func @transform_1(%arg0: i32) -> (i32, i32) {
    %c0_i32 = arith.constant 0 : i32
    %c0_i32_0 = arith.constant 0 : i32
    return %arg0, %c0_i32 : i32, i32
  }
  func.func @transform_2(%arg0: i32) -> (i32, i32) {
    %c0_i32 = arith.constant 0 : i32
    %c0_i32_0 = arith.constant 0 : i32
    %c0_i32_1 = arith.constant 0 : i32
    return %c0_i32, %c0_i32_0 : i32, i32
  }
  func.func @transform_3(%arg0: i32) -> (i32, i32) {
    %c0_i32 = arith.constant 0 : i32
    %c0_i32_0 = arith.constant 0 : i32
    %c0_i32_1 = arith.constant 0 : i32
    return %c0_i32, %c0_i32_0 : i32, i32
  }
  func.func @transform_4(%arg0: i32) -> (i32, i32) {
    %c0_i32 = arith.constant 0 : i32
    %c0_i32_0 = arith.constant 0 : i32
    %c0_i32_1 = arith.constant 0 : i32
    return %c0_i32, %c0_i32_0 : i32, i32
  }
  func.func @transform_5(%arg0: i32) -> (i32, i32) {
    %c0_i32 = arith.constant 0 : i32
    %c0_i32_0 = arith.constant 0 : i32
    %c0_i32_1 = arith.constant 0 : i32
    return %c0_i32, %c0_i32_0 : i32, i32
  }
  func.func @transform_6(%arg0: i32) -> (i32, i32) {
    %c0_i32 = arith.constant 0 : i32
    %c0_i32_0 = arith.constant 0 : i32
    %c0_i32_1 = arith.constant 0 : i32
    return %c0_i32, %c0_i32_0 : i32, i32
  }
  func.func @transform_7(%arg0: i32) -> (i32, i32) {
    %c0_i32 = arith.constant 0 : i32
    %c0_i32_0 = arith.constant 0 : i32
    %c0_i32_1 = arith.constant 0 : i32
    return %c0_i32, %c0_i32_0 : i32, i32
  }
  func.func @transform_8(%arg0: i32) -> (i32, i32) {
    %c0_i32 = arith.constant 0 : i32
    %c0_i32_0 = arith.constant 0 : i32
    %c0_i32_1 = arith.constant 0 : i32
    return %c0_i32, %c0_i32_0 : i32, i32
  }
  func.func @transform_9(%arg0: i32) -> (i32, i32) {
    %c0_i32 = arith.constant 0 : i32
    %c0_i32_0 = arith.constant 0 : i32
    %c0_i32_1 = arith.constant 0 : i32
    return %c0_i32, %c0_i32_0 : i32, i32
  }
  func.func @transform_10(%arg0: i32) -> (i32, i32) {
    %c0_i32 = arith.constant 0 : i32
    %c0_i32_0 = arith.constant 0 : i32
    %c0_i32_1 = arith.constant 0 : i32
    return %c0_i32, %c0_i32_0 : i32, i32
  }
  func.func @transform_11(%arg0: i32) -> (i32, i32) {
    %c0_i32 = arith.constant 0 : i32
    %c0_i32_0 = arith.constant 0 : i32
    %c0_i32_1 = arith.constant 0 : i32
    return %c0_i32, %c0_i32_0 : i32, i32
  }
  func.func @transform_12(%arg0: i32) -> (i32, i32) {
    %c0_i32 = arith.constant 0 : i32
    %c0_i32_0 = arith.constant 0 : i32
    %c0_i32_1 = arith.constant 0 : i32
    return %c0_i32, %c0_i32_0 : i32, i32
  }
  func.func @transform_13(%arg0: i32) -> (i32, i32) {
    %c0_i32 = arith.constant 0 : i32
    %c0_i32_0 = arith.constant 0 : i32
    return %arg0, %c0_i32 : i32, i32
  }
}

</mosaic_0001>

<bundles_post_ra>
// kernel: tpu_custom_call.1
= control target key start
LH: loop header
LB: loop body
LE: loop exit
PB: predicated region body
PF: predicated region fallthrough
CT: control target
= control target key end

     0   :  { %18 = vsyncpa [#allocation3], 0  ;;  %s2282_s0 = inlined_call_operand.hbm [shape: bf16[8,128], index: 0, kind: input, shape index: {}]   ;;  %s2283_s1 = inlined_call_operand.hbm [shape: bf16[8,128], index: 1, kind: input, shape index: {}]   ;;  %s2284_s2 = inlined_call_operand.hbm [shape: bf16[128,128], index: 2, kind: input, shape index: {}]   ;;  %s2285_s3 = inlined_call_operand.hbm [shape: bf16[128,256], index: 3, kind: input, shape index: {}]   ;;  %s2286_s4 = inlined_call_operand.hbm [shape: f32[1,256], index: 4, kind: input, shape index: {}]   ;;  %s2287_s5 = inlined_call_operand.hbm [shape: bf16[256,128], index: 5, kind: input, shape index: {}]   ;;  %s2288_s6 = inlined_call_operand.hbm [shape: bf16[128,384], index: 6, kind: input, shape index: {}]   ;;  %s2289_s7 = inlined_call_operand.vmem [shape: f32[1,384], index: 7, kind: input, shape index: {}]   ;;  %s2290_s8 = inlined_call_operand.hbm [shape: bf16[128,128], index: 8, kind: input, shape index: {}]   ;;  %s2291_s9 = inlined_call_operand.hbm [shape: bf16[128,128], index: 9, kind: input, shape index: {}]   ;;  %s2292_s10 = inlined_call_operand.hbm [shape: bf16[128,128], index: 10, kind: input, shape index: {}]   ;;  %s2293_s11 = inlined_call_operand.hbm [shape: bf16[128,128], index: 11, kind: input, shape index: {}]   ;;  %s2294_s12 = inlined_call_operand.vmem [shape: f32[8,128], index: 12, kind: input, shape index: {}]   ;;  %s2295_s13 = inlined_call_operand.hbm [shape: f32[8,128], index: 13, kind: output, shape index: {}]  }
   0x1   :  { %19 = vsyncpa [#allocation6], 0 }
   0x2   :  { %20 = vsyncpa [#allocation9], 0 }
   0x3   :  { %21 = vsyncpa [#allocation12], 0 }
   0x4   :  { %22 = vsyncpa [#allocation15], 0 }
   0x5   :  { %23 = vsyncpa [#allocation18], 0  ;;  %s41_s27 = sshll.u32 %s2283_s1, 4  ;;  %s42_s27 = int_to_ptr.hbm [resolvable:$true] %s41_s27 }
   0x6   :  { %24 = vsyncpa [#allocation4], 0  ;;  %s2074_s28 = smov [#allocation5]   ;;  %s64_s15 = sshll.u32 %s2285_s3, 4  ;;  %s65_s15 = int_to_ptr.hbm [resolvable:$true] %s64_s15 }
   0x7   :  { %s43_s29 = sshll.u32 %s2074_s28, 4  ;;  %s2075_s16 = smov [#allocation8]   ;;  %s44_s29 = int_to_ptr.vmem [resolvable:$true] %s43_s29 }
   0x8   :  { %46 = dma.hbm_to_vmem [thread:$0]  %s42_s27, 64, %s44_s29, [#allocation6]  }
   0x9   :  { %s66_s17 = sshll.u32 %s2075_s16, 4  ;;  %s2076_s18 = smov 128   ;;  %s67_s17 = int_to_ptr.vmem [resolvable:$true] %s66_s17 }
   0xa   :  { %s2077_s19 = smov 8   ;;  %s88_s1 = sshll.u32 %s2287_s5, 4  ;;  %s89_s1 = int_to_ptr.hbm [resolvable:$true] %s88_s1 }
   0xb   :  { %72 = dma.hbm_to_vmem [thread:$0]  %s65_s15, 2048, %s67_s17, [#allocation9], %s2076_s18, %s2076_s18, %s2077_s19  }
   0xc   :  { %s2078_s22 = smov [#allocation11]   ;;  %s116_s3 = sshll.u32 %s2290_s8, 4  ;;  %s117_s3 = int_to_ptr.hbm [resolvable:$true] %s116_s3 }
   0xd   :  { %s90_s23 = sshll.u32 %s2078_s22, 4  ;;  %s2079_s26 = smov 64   ;;  %s91_s23 = int_to_ptr.vmem [resolvable:$true] %s90_s23 }
   0xe   :  { %s2080_s27 = smov 4   ;;  %s2081_s28 = smov [#allocation14]  }
   0xf   :  { %96 = dma.hbm_to_vmem [thread:$0]  %s89_s1, 2048, %s91_s23, [#allocation12], %s2079_s26, %s2079_s26, %s2080_s27  }
  0x10   :  { %s118_s29 = sshll.u32 %s2081_s28, 4  ;;  %s142_s5 = sshll.u32 %s2292_s10, 4  ;;  %s119_s29 = int_to_ptr.vmem [resolvable:$true] %s118_s29  ;;  %s143_s5 = int_to_ptr.hbm [resolvable:$true] %s142_s5 }
  0x11   :  { %124 = dma.hbm_to_vmem [thread:$0]  %s117_s3, 1024, %s119_s29, [#allocation15], %s2079_s26, %s2079_s26, %s2080_s27  }
  0x12   :  { %s30_s16 = sshll.u32 %s2282_s0, 4  ;;  %s2082_s17 = smov [#allocation17]   ;;  %s31_s16 = int_to_ptr.hbm [resolvable:$true] %s30_s16 }
  0x13   :  { %s144_s18 = sshll.u32 %s2082_s17, 4  ;;  %s2083_s19 = smov [#allocation2]   ;;  %s145_s18 = int_to_ptr.vmem [resolvable:$true] %s144_s18 }
  0x14   :  { %150 = dma.hbm_to_vmem [thread:$0]  %s143_s5, 1024, %s145_s18, [#allocation18], %s2079_s26, %s2079_s26, %s2080_s27  }
  0x15   :  { %s32_s10 = sshll.u32 %s2083_s19, 4  ;;  %s51_s1 = sshll.u32 %s2284_s2, 4  ;;  %s33_s10 = int_to_ptr.vmem [resolvable:$true] %s32_s10  ;;  %s52_s1 = int_to_ptr.hbm [resolvable:$true] %s51_s1 }
  0x16   :  { %35 = dma.hbm_to_vmem [thread:$0]  %s31_s16, 64, %s33_s10, [#allocation3]  }
  0x17   :  { %s78_s0 = sshll.u32 %s2286_s4, 4  ;;  %s2084_s24 = smov [#allocation7]   ;;  %s79_s0 = int_to_ptr.hbm [resolvable:$true] %s78_s0 }
  0x18   :  { %s53_s25 = sshll.u32 %s2084_s24, 4  ;;  %s2085_s3 = smov [#allocation10]   ;;  %s54_s25 = int_to_ptr.vmem [resolvable:$true] %s53_s25 }
  0x19   :  { %59 = dma.hbm_to_vmem [thread:$0]  %s52_s1, 1024, %s54_s25, [#allocation6], %s2079_s26, %s2079_s26, %s2080_s27  }
  0x1a   :  { %s80_s28 = sshll.u32 %s2085_s3, 4  ;;  %s101_s2 = sshll.u32 %s2288_s6, 4  ;;  %s81_s28 = int_to_ptr.vmem [resolvable:$true] %s80_s28  ;;  %s102_s2 = int_to_ptr.hbm [resolvable:$true] %s101_s2 }
  0x1b   :  { %83 = dma.hbm_to_vmem [thread:$0]  %s79_s0, 32, %s81_s28, [#allocation9]  }
  0x1c   :  { %s2086_s14 = smov [#allocation13]   ;;  %s129_s15 = sshll.u32 %s2291_s9, 4  ;;  %s130_s15 = int_to_ptr.hbm [resolvable:$true] %s129_s15 }
  0x1d   :  { %s103_s5 = sshll.u32 %s2086_s14, 4  ;;  %s2087_s16 = smov 192   ;;  %s104_s5 = int_to_ptr.vmem [resolvable:$true] %s103_s5 }
  0x1e   :  { %s2088_s17 = smov 12   ;;  %s2089_s18 = smov [#allocation16]  }
  0x1f   :  { %109 = dma.hbm_to_vmem [thread:$0]  %s102_s2, 3072, %s104_s5, [#allocation12], %s2087_s16, %s2087_s16, %s2088_s17  }
  0x20   :  { %s131_s19 = sshll.u32 %s2089_s18, 4  ;;  %s155_s6 = sshll.u32 %s2293_s11, 4  ;;  %s132_s19 = int_to_ptr.vmem [resolvable:$true] %s131_s19  ;;  %s156_s6 = int_to_ptr.hbm [resolvable:$true] %s155_s6 }
  0x21   :  { %137 = dma.hbm_to_vmem [thread:$0]  %s130_s15, 1024, %s132_s19, [#allocation15], %s2079_s26, %s2079_s26, %s2080_s27  }
  0x22   :  { %s2090_s21 = smov [#allocation19]  }
  0x23   :  { %s157_s1 = sshll.u32 %s2090_s21, 4  ;;  %s158_s1 = int_to_ptr.vmem [resolvable:$true] %s157_s1 }
  0x24   :  { %163 = dma.hbm_to_vmem [thread:$0]  %s156_s6, 1024, %s158_s1, [#allocation18], %s2079_s26, %s2079_s26, %s2080_s27  }
  0x25   :  { %2060 = dma.done.wait [#allocation3], 64  }
  0x26   :  { %2061 = vsyncadd [#allocation3], 4294967232 }
  0x27   :  { %2062 = dma.done.wait [#allocation6], 1088  }
  0x28   :  { %2063 = vsyncadd [#allocation6], 4294966208 }
  0x29   :  { %2064 = dma.done.wait [#allocation9], 2080  }
  0x2a   :  { %2065 = vsyncadd [#allocation9], 4294965216 }
  0x2b   :  { %2066 = dma.done.wait [#allocation12], 5120  }
  0x2c   :  { %2067 = vsyncadd [#allocation12], 4294962176 }
  0x2d   :  { %2068 = dma.done.wait [#allocation15], 2048  }
  0x2e   :  { %2069 = vsyncadd [#allocation15], 4294965248 }
  0x2f   :  { %2070 = dma.done.wait [#allocation18], 2048  }
  0x30   :  { %2071 = vsyncadd [#allocation18], 4294965248  ;;  %v1349_v0 = vld [vmem:[#allocation8 + $0x70] sm:$0xf]  ;;  %v1668_v1 = vld [vmem:[#allocation8 + $0x74] sm:$0xf0] }
  0x31   :  { %v1667_v2 = vld [vmem:[#allocation8 + $0x74] sm:$0xf]  ;;  %v1350_v3 = vor.u32 %v1668_v1, %v1349_v0  ;;  %v1351_v4 = vld [vmem:[#allocation8 + $0x78] sm:$0xf0]  ;;  %v1341_v5 = vld [vmem:[#allocation8 + $0x60] sm:$0xf] }
  0x32   :  { %v1666_v6 = vld [vmem:[#allocation8 + $0x64] sm:$0xf0]  ;;  %v1354_v7 = vor.u32 %v1667_v2, %v1351_v4  ;;  %v1665_v8 = vld [vmem:[#allocation8 + $0x64] sm:$0xf]  ;;  %v1343_v9 = vld [vmem:[#allocation8 + $0x68] sm:$0xf0] }
  0x33   :  { %394 = vmatpush.bf16.msra.mxu1 %v1350_v3  ;;  %v1342_v10 = vor.u32 %v1666_v6, %v1341_v5  ;;  %v1346_v11 = vor.u32 %v1665_v8, %v1343_v9  ;;  %v1333_v12 = vld [vmem:[#allocation8 + $0x50] sm:$0xf]  ;;  %v1664_v13 = vld [vmem:[#allocation8 + $0x54] sm:$0xf0]  ;;  %v1663_v14 = vld [vmem:[#allocation8 + $0x54] sm:$0xf] }
  0x34   :  { %407 = vmatpush.bf16.msra.mxu2 %v1354_v7  ;;  %v1335_v15 = vld [vmem:[#allocation8 + $0x58] sm:$0xf0]  ;;  %v1334_v16 = vor.u32 %v1664_v13, %v1333_v12  ;;  %v1325_v18 = vld [vmem:[#allocation8 + $0x40] sm:$0xf]  ;;  %v1662_v19 = vld [vmem:[#allocation8 + $0x44] sm:$0xf0] }
  0x35   :  { %v1338_v17 = vor.u32 %v1663_v14, %v1335_v15  ;;  %v1661_v20 = vld [vmem:[#allocation8 + $0x44] sm:$0xf]  ;;  %v1327_v21 = vld [vmem:[#allocation8 + $0x48] sm:$0xf0]  ;;  %v1326_v22 = vor.u32 %v1662_v19, %v1325_v18  ;;  %v1652_v23 = vld [vmem:[#allocation7 + $0x38] sm:$0xff]  ;;  %s1244_s0 = sshll.u32 %s2295_s13, 4  ;;  %s1245_s0 = int_to_ptr.hbm [resolvable:$true] %s1244_s0 }
  0x36   :  { %v1330_v24 = vor.u32 %v1661_v20, %v1327_v21  ;;  %v1317_v25 = vld [vmem:[#allocation8 + $0x30] sm:$0xf]  ;;  %v1660_v26 = vld [vmem:[#allocation8 + $0x34] sm:$0xf0]  ;;  %v1659_v27 = vld [vmem:[#allocation8 + $0x34] sm:$0xf]  ;;  %277 = vmatpush.bf16.msra.mxu0 %v1652_v23 }
  0x37   :  { %395 = vmatpush.bf16.msra.mxu1 %v1342_v10  ;;  %v1319_v28 = vld [vmem:[#allocation8 + $0x38] sm:$0xf0]  ;;  %v1651_v29 = vld [vmem:[#allocation7 + $0x30] sm:$0xff]  ;;  %v1318_v31 = vor.u32 %v1660_v26, %v1317_v25  ;;  %v1309_v34 = vld [vmem:[#allocation8 + $0x20] sm:$0xf] }
  0x38   :  { %408 = vmatpush.bf16.msra.mxu2 %v1346_v11  ;;  %v1676_v30 = vld [vmem:[#allocation11 + $0x38] sm:$0xff]  ;;  %v1675_v32 = vld [vmem:[#allocation11 + $0x30] sm:$0xff]  ;;  %v1322_v33 = vor.u32 %v1659_v27, %v1319_v28  ;;  %v1658_v35 = vld [vmem:[#allocation8 + $0x24] sm:$0xf0] }
  0x39   :  { %553 = vmatpush.bf16.msra.mxu3 %v1676_v30  ;;  %v1657_v36 = vld [vmem:[#allocation8 + $0x24] sm:$0xf]  ;;  %v1311_v37 = vld [vmem:[#allocation8 + $0x28] sm:$0xf0]  ;;  %v1310_v39 = vor.u32 %v1658_v35, %v1309_v34  ;;  %v1301_v42 = vld [vmem:[#allocation8 + $0x10] sm:$0xf] }
  0x3a   :  { %278 = vmatpush.bf16.msra.mxu0 %v1651_v29  ;;  %v1650_v38 = vld [vmem:[#allocation7 + $0x28] sm:$0xff]  ;;  %v1314_v41 = vor.u32 %v1657_v36, %v1311_v37  ;;  %v1656_v43 = vld [vmem:[#allocation8 + $0x14] sm:$0xf0]  ;;  %v1655_v44 = vld [vmem:[#allocation8 + $0x14] sm:$0xf] }
  0x3b   :  { %396 = vmatpush.bf16.msra.mxu1 %v1334_v16  ;;  %v1674_v40 = vld [vmem:[#allocation11 + $0x28] sm:$0xff]  ;;  %v1303_v45 = vld [vmem:[#allocation8 + $0x18] sm:$0xf0]  ;;  %v1649_v46 = vld [vmem:[#allocation7 + $0x20] sm:$0xff]  ;;  %v1302_v47 = vor.u32 %v1656_v43, %v1301_v42 }
  0x3c   :  { %409 = vmatpush.bf16.msra.mxu2 %v1338_v17  ;;  %v1673_v48 = vld [vmem:[#allocation11 + $0x20] sm:$0xff]  ;;  %v1306_v49 = vor.u32 %v1655_v44, %v1303_v45  ;;  %v1295_v53 = vld [vmem:[#allocation8 + $0x8] sm:$0xf0]  ;;  %v1648_v54 = vld [vmem:[#allocation7 + $0x18] sm:$0xff] }
  0x3d   :  { %554 = vmatpush.bf16.msra.mxu3 %v1675_v32  ;;  %v1293_v50 = vld [vmem:[#allocation8] sm:$0xf]  ;;  %v1654_v51 = vld [vmem:[#allocation8 + $0x4] sm:$0xf0]  ;;  %v1653_v52 = vld [vmem:[#allocation8 + $0x4] sm:$0xf] }
  0x3e   :  { %279 = vmatpush.bf16.msra.mxu0 %v1650_v38  ;;  %v1294_v55 = vor.u32 %v1654_v51, %v1293_v50  ;;  %v1672_v56 = vld [vmem:[#allocation11 + $0x18] sm:$0xff]  ;;  %v1298_v57 = vor.u32 %v1653_v52, %v1295_v53  ;;  %v1647_v58 = vld [vmem:[#allocation7 + $0x10] sm:$0xff]  ;;  %v1646_v61 = vld [vmem:[#allocation7 + $0x8] sm:$0xff] }
  0x3f   :  { %397 = vmatpush.bf16.msra.mxu1 %v1326_v22  ;;  %v291_v59 = vld [vmem:[#allocation5] sm:$0xf]  ;;  %v1671_v60 = vld [vmem:[#allocation11 + $0x10] sm:$0xff]  ;;  %v1645_v62 = vld [vmem:[#allocation7] sm:$0xff] }
  0x40   :  { %410 = vmatpush.bf16.msra.mxu2 %v1330_v24  ;;  %v1684_v63 = vld [vmem:[#allocation11 + $0x78] sm:$0xff]  ;;  %v1683_v1 = vld [vmem:[#allocation11 + $0x70] sm:$0xff]  ;;  %v1682_v2 = vld [vmem:[#allocation11 + $0x68] sm:$0xff] }
  0x41   :  { %555 = vmatpush.bf16.msra.mxu3 %v1674_v40  ;;  %v211_v0 = vld [vmem:[#allocation2] sm:$0xf]  ;;  %v1681_v3 = vld [vmem:[#allocation11 + $0x60] sm:$0xff]  ;;  %v1670_v5 = vld [vmem:[#allocation11 + $0x8] sm:$0xff] }
  0x42   :  { %280 = vmatpush.bf16.msra.mxu0 %v1649_v46  ;;  %v1680_v4 = vld [vmem:[#allocation11 + $0x58] sm:$0xff]  ;;  %v1679_v6 = vld [vmem:[#allocation11 + $0x50] sm:$0xff]  ;;  %v1669_v7 = vld [vmem:[#allocation11] sm:$0xff] }
  0x43   :  { %398 = vmatpush.bf16.msra.mxu1 %v1318_v31  ;;  %v1678_v8 = vld [vmem:[#allocation11 + $0x48] sm:$0xff]  ;;  %v1677_v9 = vld [vmem:[#allocation11 + $0x40] sm:$0xff]  ;;  %v1707_v11 = vld [vmem:[#allocation13 + $0xb0] sm:$0xf0] }
  0x44   :  { %411 = vmatpush.bf16.msra.mxu2 %v1322_v33  ;;  %v1505_v10 = vld [vmem:[#allocation13 + $0xa8] sm:$0xf]  ;;  %v1706_v12 = vld [vmem:[#allocation13 + $0xac] sm:$0xf]  ;;  %v1507_v14 = vld [vmem:[#allocation13 + $0xb4] sm:$0xf0] }
  0x45   :  { %556 = vmatpush.bf16.msra.mxu3 %v1673_v48  ;;  %v1506_v13 = vor.u32 %v1707_v11, %v1505_v10  ;;  %v1493_v15 = vld [vmem:[#allocation13 + $0x90] sm:$0xf]  ;;  %v1704_v16 = vld [vmem:[#allocation13 + $0x98] sm:$0xf0]  ;;  %v2214_v17 = vor.u32 %v1706_v12, %v1507_v14  ;;  %v1703_v18 = vld [vmem:[#allocation13 + $0x94] sm:$0xf] }
  0x46   :  { %281 = vmatpush.bf16.msra.mxu0 %v1648_v54  ;;  %v1495_v19 = vld [vmem:[#allocation13 + $0x9c] sm:$0xf0]  ;;  %v1513_v20 = vld [vmem:[#allocation13 + $0xb0] sm:$0xf]  ;;  %v1494_v21 = vor.u32 %v1704_v16, %v1493_v15  ;;  %v1708_v22 = vld [vmem:[#allocation13 + $0xb8] sm:$0xf0] }
  0x47   :  { %399 = vmatpush.bf16.msra.mxu1 %v1310_v39  ;;  %v2217_v23 = vor.u32 %v1703_v18, %v1495_v19  ;;  %v2219_v24 = vor.u32 %v1708_v22, %v1513_v20  ;;  %v1481_v25 = vld [vmem:[#allocation13 + $0x78] sm:$0xf]  ;;  %v1701_v26 = vld [vmem:[#allocation13 + $0x80] sm:$0xf0]  ;;  %v1700_v28 = vld [vmem:[#allocation13 + $0x7c] sm:$0xf] }
  0x48   :  { %412 = vmatpush.bf16.msra.mxu2 %v1314_v41  ;;  %v1501_v27 = vld [vmem:[#allocation13 + $0x98] sm:$0xf]  ;;  %v1483_v29 = vld [vmem:[#allocation13 + $0x84] sm:$0xf0]  ;;  %v1705_v30 = vld [vmem:[#allocation13 + $0xa0] sm:$0xf0]  ;;  %v1482_v32 = vor.u32 %v1701_v26, %v1481_v25 }
  0x49   :  { %557 = vmatpush.bf16.msra.mxu3 %v1672_v56  ;;  %v2222_v31 = vor.u32 %v1705_v30, %v1501_v27  ;;  %v1489_v33 = vld [vmem:[#allocation13 + $0x80] sm:$0xf]  ;;  %v1702_v34 = vld [vmem:[#allocation13 + $0x88] sm:$0xf0]  ;;  %v2225_v35 = vor.u32 %v1700_v28, %v1483_v29  ;;  %v1697_v38 = vld [vmem:[#allocation13 + $0x64] sm:$0xf] }
  0x4a   :  { %282 = vmatpush.bf16.msra.mxu0 %v1647_v58  ;;  %v1469_v36 = vld [vmem:[#allocation13 + $0x60] sm:$0xf]  ;;  %v1698_v37 = vld [vmem:[#allocation13 + $0x68] sm:$0xf0]  ;;  %v1471_v39 = vld [vmem:[#allocation13 + $0x6c] sm:$0xf0]  ;;  %v2228_v40 = vor.u32 %v1702_v34, %v1489_v33 }
  0x4b   :  { %400 = vmatpush.bf16.msra.mxu1 %v1302_v47  ;;  %v308_v41 = vld [vmem:[#allocation10] sm:$0x3]  ;;  %v1470_v42 = vor.u32 %v1698_v37, %v1469_v36  ;;  %v1477_v43 = vld [vmem:[#allocation13 + $0x68] sm:$0xf]  ;;  %v1699_v44 = vld [vmem:[#allocation13 + $0x70] sm:$0xf0]  ;;  %v2231_v45 = vor.u32 %v1697_v38, %v1471_v39 }
  0x4c   :  { %413 = vmatpush.bf16.msra.mxu2 %v1306_v49  ;;  %v1457_v46 = vld [vmem:[#allocation13 + $0x48] sm:$0xf]  ;;  %v1695_v47 = vld [vmem:[#allocation13 + $0x50] sm:$0xf0]  ;;  %v1694_v48 = vld [vmem:[#allocation13 + $0x4c] sm:$0xf]  ;;  %v2234_v51 = vor.u32 %v1699_v44, %v1477_v43 }
  0x4d   :  { %558 = vmatpush.bf16.msra.mxu3 %v1671_v60  ;;  %v1459_v49 = vld [vmem:[#allocation13 + $0x54] sm:$0xf0]  ;;  %v310_v50 = vperm.slane %v308_v41, 0  ;;  %v1458_v52 = vor.u32 %v1695_v47, %v1457_v46  ;;  %v1465_v53 = vld [vmem:[#allocation13 + $0x50] sm:$0xf] }
  0x4e   :  { %283 = vmatpush.bf16.msra.mxu0 %v1646_v61  ;;  %v1696_v54 = vld [vmem:[#allocation13 + $0x58] sm:$0xf0]  ;;  %v1445_v56 = vld [vmem:[#allocation13 + $0x30] sm:$0xf]  ;;  %v1447_v60 = vld [vmem:[#allocation13 + $0x3c] sm:$0xf0] }
  0x4f   :  { %401 = vmatpush.bf16.msra.mxu1 %v1294_v55  ;;  %v2237_v55 = vor.u32 %v1694_v48, %v1459_v49  ;;  %v1690_v14 = vld [vmem:[#allocation13 + $0x28] sm:$0xf0]  ;;  %v1421_v18 = vld [vmem:[#allocation13] sm:$0xf]  ;;  %v1685_v25 = vld [vmem:[#allocation13 + $0x4] sm:$0xf] }
  0x50   :  { %414 = vmatpush.bf16.msra.mxu2 %v1298_v57  ;;  %v1692_v57 = vld [vmem:[#allocation13 + $0x38] sm:$0xf0]  ;;  %v1686_v19 = vld [vmem:[#allocation13 + $0x8] sm:$0xf0]  ;;  %v1423_v26 = vld [vmem:[#allocation13 + $0xc] sm:$0xf0] }
  0x51   :  { %559 = vmatpush.bf16.msra.mxu3 %v1670_v5  ;;  %v1689_v5 = vld [vmem:[#allocation13 + $0x20] sm:$0xf0]  ;;  %v1422_v29 = vor.u32 %v1686_v19, %v1421_v18  ;;  %v1687_v33 = vld [vmem:[#allocation13 + $0x10] sm:$0xf0]  ;;  %v1426_v34 = vor.u32 %v1685_v25, %v1423_v26  ;;  %v1722_v25 = vld [vmem:[#allocation16 + $0x28] sm:$0xff] }
  0x52   :  { %402 = vmatmul.bf16.vlgmr.msra.gmra.mxu1 %v291_v59  ;;  %284 = vmatpush.bf16.msra.mxu0 %v1645_v62  ;;  %v2240_v62 = vor.u32 %v1696_v54, %v1465_v53  ;;  %v1711_v44 = vld [vmem:[#allocation14 + $0x10] sm:$0xff]  ;;  %v1721_v26 = vld [vmem:[#allocation16 + $0x20] sm:$0xff] }
  0x53   :  { %415 = vmatmul.bf16.vlgmr.msra.gmra.mxu2 %v291_v59  ;;  %750 = vmatpush.bf16.msrb.mxu1 %v1506_v13  ;;  %v1691_v59 = vld [vmem:[#allocation13 + $0x34] sm:$0xf] }
  0x54   :  { %763 = vmatpush.bf16.msrb.mxu2 %v2214_v17 }
  0x55   :  { %285 = vmatmul.bf16.vlgmr.msra.gmra.mxu0 %v211_v0  ;;  %560 = vmatpush.bf16.msra.mxu3 %v1669_v7  ;;  %v1453_v0 = vld [vmem:[#allocation13 + $0x38] sm:$0xf]  ;;  %v1688_v7 = vld [vmem:[#allocation13 + $0x1c] sm:$0xf] }
  0x56   :  { %566 = vmatpush.bf16.msrb.mxu0 %v1684_v63  ;;  %v1446_v63 = vor.u32 %v1692_v57, %v1445_v56 }
  0x57   :  { %751 = vmatpush.bf16.msrb.mxu1 %v1494_v21 }
  0x58   :  { %764 = vmatpush.bf16.msrb.mxu2 %v2217_v23 }
  0x59   :  { %776 = vmatpush.bf16.msrb.mxu3 %v2219_v24 }
  0x5a   :  { %567 = vmatpush.bf16.msrb.mxu0 %v1683_v1  ;;  %v1693_v1 = vld [vmem:[#allocation13 + $0x40] sm:$0xf0] }
  0x5b   :  { %752 = vmatpush.bf16.msrb.mxu1 %v1482_v32  ;;  %v1454_v11 = vor.u32 %v1693_v1, %v1453_v0 }
  0x5c   :  { %765 = vmatpush.bf16.msrb.mxu2 %v2225_v35 }
  0x5d   :  { %777 = vmatpush.bf16.msrb.mxu3 %v2222_v31 }
  0x5e   :  { %568 = vmatpush.bf16.msrb.mxu0 %v1682_v2 }
  0x5f   :  { %753 = vmatpush.bf16.msrb.mxu1 %v1470_v42 }
  0x60   :  { %766 = vmatpush.bf16.msrb.mxu2 %v2231_v45 }
  0x61   :  { %778 = vmatpush.bf16.msrb.mxu3 %v2228_v40 }
  0x62   :  { %569 = vmatpush.bf16.msrb.mxu0 %v1681_v3  ;;  %v1450_v3 = vor.u32 %v1691_v59, %v1447_v60 }
  0x63   :  { %754 = vmatpush.bf16.msrb.mxu1 %v1458_v52 }
  0x64   :  { %767 = vmatpush.bf16.msrb.mxu2 %v2237_v55 }
  0x65   :  { %779 = vmatpush.bf16.msrb.mxu3 %v2234_v51 }
  0x66   :  { %570 = vmatpush.bf16.msrb.mxu0 %v1680_v4  ;;  %v1433_v4 = vld [vmem:[#allocation13 + $0x18] sm:$0xf] }
  0x67   :  { %755 = vmatpush.bf16.msrb.mxu1 %v1446_v63  ;;  %v1434_v12 = vor.u32 %v1689_v5, %v1433_v4 }
  0x68   :  { %768 = vmatpush.bf16.msrb.mxu2 %v1450_v3 }
  0x69   :  { %780 = vmatpush.bf16.msrb.mxu3 %v2240_v62 }
  0x6a   :  { %571 = vmatpush.bf16.msrb.mxu0 %v1679_v6  ;;  %v311_v6 = vperm.slane %v308_v41, 1 }
  0x6b   :  { %756 = vmatpush.bf16.msrb.mxu1 %v1434_v12 }
  0x6d   :  { %781 = vmatpush.bf16.msrb.mxu3 %v1454_v11 }
  0x6e   :  { %572 = vmatpush.bf16.msrb.mxu0 %v1678_v8  ;;  %v1435_v8 = vld [vmem:[#allocation13 + $0x24] sm:$0xf0] }
  0x6f   :  { %v1438_v16 = vor.u32 %v1688_v7, %v1435_v8  ;;  %757 = vmatpush.bf16.msrb.mxu1 %v1422_v29 }
  0x71   :  { %769 = vmatpush.bf16.msrb.mxu2 %v1438_v16 }
  0x72   :  { %573 = vmatpush.bf16.msrb.mxu0 %v1677_v9  ;;  %v2246_v9 = vld [vmem:[%s2294_s12] sm:$0xff] }
  0x73   :  { %v228_v20 = vperm.slane %v2246_v9, 0  ;;  %802 = vmatpush.bf16.msra.mxu1 %v2214_v17  ;;  %v1716_v17 = vld [vmem:[#allocation14 + $0x38] sm:$0xff] }
  0x75   :  { %770 = vmatpush.bf16.msrb.mxu2 %v1426_v34 }
  0x76   :  { %789 = vmatpush.bf16.msra.mxu0 %v1506_v13  ;;  %v1441_v13 = vld [vmem:[#allocation13 + $0x20] sm:$0xf] }
  0x77   :  { %v1442_v27 = vor.u32 %v1690_v14, %v1441_v13  ;;  %803 = vmatpush.bf16.msra.mxu1 %v2217_v23  ;;  %v1715_v23 = vld [vmem:[#allocation14 + $0x30] sm:$0xff] }
  0x79   :  { %782 = vmatpush.bf16.msrb.mxu3 %v1442_v27  ;;  %815 = vmatpush.bf16.msra.mxu2 %v2219_v24  ;;  %v1714_v24 = vld [vmem:[#allocation14 + $0x28] sm:$0xff] }
  0x7a   :  { %790 = vmatpush.bf16.msra.mxu0 %v1494_v21 }
  0x7b   :  { %804 = vmatpush.bf16.msra.mxu1 %v2225_v35  ;;  %v1712_v35 = vld [vmem:[#allocation14 + $0x18] sm:$0xff] }
  0x7d   :  { %816 = vmatpush.bf16.msra.mxu2 %v2222_v31  ;;  %v1713_v31 = vld [vmem:[#allocation14 + $0x20] sm:$0xff] }
  0x7e   :  { %791 = vmatpush.bf16.msra.mxu0 %v1482_v32  ;;  %v1429_v32 = vld [vmem:[#allocation13 + $0x8] sm:$0xf] }
  0x7f   :  { %v1430_v39 = vor.u32 %v1687_v33, %v1429_v32  ;;  %805 = vmatpush.bf16.msra.mxu1 %v2231_v45  ;;  %v1718_v32 = vld [vmem:[#allocation16 + $0x8] sm:$0xff] }
  0x81   :  { %783 = vmatpush.bf16.msrb.mxu3 %v1430_v39  ;;  %817 = vmatpush.bf16.msra.mxu2 %v2228_v40  ;;  %v456_v40 = vperm.slane %v2246_v9, 1 }
  0x82   :  { %792 = vmatpush.bf16.msra.mxu0 %v1470_v42 }
  0x83   :  { %806 = vmatpush.bf16.msra.mxu1 %v2237_v55  ;;  %v614_v55 = vld [vmem:[%s2289_s7] sm:$0x7]  ;;  %s2092_s7 = smov [#allocation20]  }
  0x84   :  { %v618_v57 = vperm.slane %v614_v55, 2  ;;  %v617_v0 = vperm.slane %v614_v55, 1  ;;  %v616_v1 = vperm.slane %v614_v55, 0  ;;  %s1242_s27 = sshll.u32 %s2092_s7, 4  ;;  %s1243_s27 = int_to_ptr.vmem [resolvable:$true] %s1242_s27 }
  0x85   :  { %818 = vmatpush.bf16.msra.mxu2 %v2234_v51 }
  0x86   :  { %793 = vmatpush.bf16.msra.mxu0 %v1458_v52 }
  0x87   :  { %807 = vmatpush.bf16.msra.mxu1 %v1450_v3 }
  0x89   :  { %819 = vmatpush.bf16.msra.mxu2 %v2240_v62  ;;  %v1710_v62 = vld [vmem:[#allocation14 + $0x8] sm:$0xff] }
  0x8a   :  { %794 = vmatpush.bf16.msra.mxu0 %v1446_v63  ;;  %v1709_v63 = vld [vmem:[#allocation14] sm:$0xff] }
  0x8b   :  { %808 = vmatpush.bf16.msra.mxu1 %v1438_v16 }
  0x8d   :  { %820 = vmatpush.bf16.msra.mxu2 %v1454_v11 }
  0x8e   :  { %795 = vmatpush.bf16.msra.mxu0 %v1434_v12 }
  0x8f   :  { %809 = vmatpush.bf16.msra.mxu1 %v1426_v34 }
  0x91   :  { %821 = vmatpush.bf16.msra.mxu2 %v1442_v27  ;;  %v1720_v27 = vld [vmem:[#allocation16 + $0x18] sm:$0xff] }
  0x92   :  { %796 = vmatpush.bf16.msra.mxu0 %v1422_v29 }
  0x95   :  { %822 = vmatpush.bf16.msra.mxu2 %v1430_v39 }
  0xcf   :  { %v403_v58 = vpop.f32.mrf.mxu1 }
  0xd0   :  { %v404_v61 = vadd.f32 %v403_v58, %v310_v50 }
  0xd2   :  { %v420_v2 = vmax.f32 %v404_v61, 0.0  ;;  %v286_v30 = vpop.f32.mrf.mxu0 }
  0xd3   :  { %v287_v36 = vadd.f32 %v286_v30, %v228_v20 }
  0xd4   :  { %v422_v10 = vpack.c.bf16 %v420_v2, %v420_v2 }
  0xd5   :  { %v290_v38 = vmax.f32 %v287_v36, 0.0  ;;  %v1717_v36 = vld [vmem:[#allocation16] sm:$0xff] }
  0xd6   :  { %v416_v15 = vpop.f32.mrf.mxu2  ;;  %561 = vmatmul.bf16.vlgmr.msra.gmra.mxu3 %v422_v10 }
  0xd7   :  { %v417_v21 = vadd.f32 %v416_v15, %v311_v6  ;;  %v405_v22 = vpop.f32.mrf.mxu1  ;;  %v580_v42 = vpack.c.bf16 %v290_v38, %v290_v38  ;;  %895 = vmatpush.bf16.msra.mxu3 %v1716_v17 }
  0xd8   :  { %v1723_v22 = vld [vmem:[#allocation16 + $0x30] sm:$0xff] }
  0xd9   :  { %v421_v28 = vmax.f32 %v417_v21, 0.0  ;;  %758 = vmatmul.bf16.vlgmr.msrb.gmra.mxu1 %v580_v42  ;;  %771 = vmatmul.bf16.vlgmr.msrb.gmra.mxu2 %v580_v42  ;;  %v1724_v21 = vld [vmem:[#allocation16 + $0x38] sm:$0xff] }
  0xda   :  { %v288_v43 = vpop.f32.mrf.mxu0  ;;  %1032 = vmatpush.bf16.msrb.mxu1 %v1724_v21  ;;  %v1740_v21 = vld [vmem:[#allocation19 + $0x38] sm:$0xff] }
  0xdb   :  { %v423_v37 = vpack.c.bf16 %v421_v28, %v421_v28  ;;  %896 = vmatpush.bf16.msra.mxu3 %v1715_v23  ;;  %v1719_v28 = vld [vmem:[#allocation16 + $0x10] sm:$0xff] }
  0xdd   :  { %574 = vmatmul.bf16.vlgmr.msrb.gmra.mxu0 %v423_v37 }
  0xde   :  { %v418_v41 = vpop.f32.mrf.mxu2  ;;  %910 = vmatpush.bf16.msrb.mxu0 %v1716_v17  ;;  %1033 = vmatpush.bf16.msrb.mxu1 %v1723_v22  ;;  %v1731_v17 = vld [vmem:[#allocation17 + $0x30] sm:$0xff] }
  0xdf   :  { %897 = vmatpush.bf16.msra.mxu3 %v1714_v24  ;;  %v1732_v41 = vld [vmem:[#allocation17 + $0x38] sm:$0xff] }
  0xe0   :  { %1112 = vmatpush.bf16.msrb.mxu2 %v1732_v41  ;;  %v1735_v41 = vld [vmem:[#allocation19 + $0x10] sm:$0xff] }
  0xe2   :  { %911 = vmatpush.bf16.msrb.mxu0 %v1715_v23  ;;  %1034 = vmatpush.bf16.msrb.mxu1 %v1722_v25 }
  0xe3   :  { %898 = vmatpush.bf16.msra.mxu3 %v1713_v31 }
  0xe4   :  { %1113 = vmatpush.bf16.msrb.mxu2 %v1731_v17 }
  0xe6   :  { %784 = vmatmul.bf16.vlgmr.msrb.gmra.mxu3 %v580_v42  ;;  %912 = vmatpush.bf16.msrb.mxu0 %v1714_v24 }
  0xe7   :  { %899 = vmatpush.bf16.msra.mxu3 %v1712_v35  ;;  %1035 = vmatpush.bf16.msrb.mxu1 %v1721_v26 }
  0xea   :  { %913 = vmatpush.bf16.msrb.mxu0 %v1713_v31 }
  0xeb   :  { %900 = vmatpush.bf16.msra.mxu3 %v1711_v44  ;;  %1036 = vmatpush.bf16.msrb.mxu1 %v1720_v27 }
  0xee   :  { %914 = vmatpush.bf16.msrb.mxu0 %v1712_v35  ;;  %v1730_v35 = vld [vmem:[#allocation17 + $0x28] sm:$0xff] }
  0xef   :  { %901 = vmatpush.bf16.msra.mxu3 %v1710_v62  ;;  %1037 = vmatpush.bf16.msrb.mxu1 %v1719_v28 }
  0xf0   :  { %1114 = vmatpush.bf16.msrb.mxu2 %v1730_v35 }
  0xf2   :  { %915 = vmatpush.bf16.msrb.mxu0 %v1711_v44 }
  0xf3   :  { %902 = vmatpush.bf16.msra.mxu3 %v1709_v63  ;;  %1038 = vmatpush.bf16.msrb.mxu1 %v1718_v32 }
  0xf6   :  { %916 = vmatpush.bf16.msrb.mxu0 %v1710_v62 }
  0xf7   :  { %1039 = vmatpush.bf16.msrb.mxu1 %v1717_v36  ;;  %1223 = vmatpush.bf16.msrb.mxu3 %v1740_v21  ;;  %v1739_v36 = vld [vmem:[#allocation19 + $0x30] sm:$0xff] }
  0xfa   :  { %917 = vmatpush.bf16.msrb.mxu0 %v1709_v63 }
  0xfb   :  { %1224 = vmatpush.bf16.msrb.mxu3 %v1739_v36 }
 0x156   :  { %v759_v49 = vpop.f32.mrf.mxu1 }
 0x157   :  { %v760_v6 = vadd.f32 %v759_v49, %v616_v1 }
 0x159   :  { %v562_v45 = vpop.f32.mrf.mxu3 }
 0x15a   :  { %v563_v46 = vadd.f32 %v562_v45, %v456_v40  ;;  %v575_v47 = vpop.f32.mrf.mxu0  ;;  %v1729_v45 = vld [vmem:[#allocation17 + $0x20] sm:$0xff] }
 0x15b   :  { %1115 = vmatpush.bf16.msrb.mxu2 %v1729_v45 }
 0x15c   :  { %v576_v48 = vadd.f32 %v575_v47, %v563_v46  ;;  %v772_v54 = vpop.f32.mrf.mxu2 }
 0x15d   :  { %v773_v4 = vadd.f32 %v772_v54, %v617_v0 }
 0x15e   :  { %v579_v50 = vmax.f32 %v576_v48, 0.0  ;;  %v761_v56 = vpop.f32.mrf.mxu1 }
 0x160   :  { %v581_v51 = vpack.c.bf16 %v579_v50, %v579_v50  ;;  %v1728_v50 = vld [vmem:[#allocation17 + $0x18] sm:$0xff] }
 0x161   :  { %v564_v52 = vpop.f32.mrf.mxu3  ;;  %1116 = vmatpush.bf16.msrb.mxu2 %v1728_v50  ;;  %v1155_v50 = vperm.slane %v2246_v9, 5 }
 0x162   :  { %v577_v53 = vpop.f32.mrf.mxu0  ;;  %797 = vmatmul.bf16.vlgmr.msra.gmra.mxu0 %v581_v51  ;;  %810 = vmatmul.bf16.vlgmr.msra.gmra.mxu1 %v581_v51 }
 0x163   :  { %823 = vmatmul.bf16.vlgmr.msra.gmra.mxu2 %v581_v51 }
 0x164   :  { %v774_v60 = vpop.f32.mrf.mxu2 }
 0x169   :  { %v785_v58 = vpop.f32.mrf.mxu3 }
 0x16a   :  { %v2264_v59 = vadd.f32 %v785_v58, %v618_v57  ;;  %v1727_v58 = vld [vmem:[#allocation17 + $0x10] sm:$0xff] }
 0x16b   :  { %1117 = vmatpush.bf16.msrb.mxu2 %v1727_v58 }
 0x171   :  { %v787_v61 = vpop.f32.mrf.mxu3 }
 0x1df   :  { %v798_v2 = vpop.f32.mrf.mxu0  ;;  %v811_v3 = vpop.f32.mrf.mxu1 }
 0x1e0   :  { %v812_v5 = vadd.f32 %v811_v3, %v617_v0  ;;  %v799_v7 = vadd.f32 %v798_v2, %v616_v1 }
 0x1e2   :  { %v828_v8 = vsub.f32 %v773_v4, %v812_v5 }
 0x1e4   :  { %v829_v10 = vmul.f32 %v828_v8, %v760_v6  ;;  %v908_v11 = vmul.f32 %v828_v8, %v799_v7  ;;  %v1726_v6 = vld [vmem:[#allocation17 + $0x8] sm:$0xff]  ;;  %v1725_v7 = vld [vmem:[#allocation17] sm:$0xff]  ;;  %v983_v8 = vperm.slane %v2246_v9, 2 }
 0x1e5   :  { %1118 = vmatpush.bf16.msrb.mxu2 %v1726_v6 }
 0x1e6   :  { %v830_v12 = vpack.c.bf16 %v829_v10, %v829_v10  ;;  %v909_v13 = vpack.c.bf16 %v908_v11, %v908_v11  ;;  %v824_v14 = vpop.f32.mrf.mxu2 }
 0x1e7   :  { %v2266_v15 = vadd.f32 %v824_v14, %v618_v57  ;;  %v800_v16 = vpop.f32.mrf.mxu0  ;;  %v813_v18 = vpop.f32.mrf.mxu1 }
 0x1e8   :  { %903 = vmatmul.bf16.vlgmr.msra.gmra.mxu3 %v830_v12  ;;  %918 = vmatmul.bf16.vlgmr.msrb.gmra.mxu0 %v909_v13  ;;  %v1063_v16 = vperm.slane %v2246_v9, 3 }
 0x1e9   :  { %v963_v19 = vsub.f32 %v2264_v59, %v2266_v15  ;;  %1119 = vmatpush.bf16.msrb.mxu2 %v1725_v7 }
 0x1ee   :  { %v826_v20 = vpop.f32.mrf.mxu2 }
 0x1ef   :  { %v2091_v20 = vmov 128.0  }
 0x265   :  { %v919_v29 = vpop.f32.mrf.mxu0 }
 0x266   :  { %v1548_v30 = vmul.f32 -1.442695, %v919_v29 }
 0x268   :  { %1760 = vpow2.f32 %v1548_v30 }
 0x26b   :  { %v904_v33 = vpop.f32.mrf.mxu3 }
 0x26c   :  { %v1547_v34 = vmul.f32 -1.442695, %v904_v33 }
 0x26d   :  { %v921_v37 = vpop.f32.mrf.mxu0 }
 0x26e   :  { %v1761_v38 = vpop.eup %1760  ;;  %1762 = vpow2.f32 %v1547_v34  ;;  %v1738_v37 = vld [vmem:[#allocation19 + $0x28] sm:$0xff] }
 0x26f   :  { %v945_v39 = vadd.f32 1.0, %v1761_v38  ;;  %1225 = vmatpush.bf16.msrb.mxu3 %v1738_v37  ;;  %v1737_v38 = vld [vmem:[#allocation19 + $0x20] sm:$0xff] }
 0x271   :  { %1764 = vrcp.f32 %v945_v39  ;;  %vm951_vm1 = vweird.f32 %v945_v39  ;;  %v957_v51 = vand.u32 2147483648, %v945_v39  ;;  %v955_v53 = vand.u32 2147483647, %v945_v39 }
 0x273   :  { %v906_v42 = vpop.f32.mrf.mxu3  ;;  %v958_v60 = vor.u32 1.1754944e-38, %v957_v51  ;;  %vm956_vm7 = vcmp.eq.f32.partialorder %v955_v53, 8.507059e+37  ;;  %1226 = vmatpush.bf16.msrb.mxu3 %v1737_v38 }
 0x274   :  { %v1763_v43 = vpop.eup %1762  ;;  %v1734_v42 = vld [vmem:[#allocation19 + $0x8] sm:$0xff] }
 0x275   :  { %v926_v23 = vadd.f32 1.0, %v1763_v43  ;;  %v1733_v43 = vld [vmem:[#allocation19] sm:$0xff] }
 0x277   :  { %v1765_v24 = vpop.eup %1764  ;;  %1766 = vrcp.f32 %v926_v23  ;;  %v938_v52 = vand.u32 2147483648, %v926_v23  ;;  %v936_v55 = vand.u32 2147483647, %v926_v23  ;;  %vm932_vm4 = vweird.f32 %v926_v23 }
 0x278   :  { %v947_v31 = vmul.f32 %v1765_v24, %v945_v39  ;;  %vm952_vm0 = vweird.f32 %v1765_v24  ;;  %1768 = vrcp.f32 %v2091_v20  ;;  %v1736_v39 = vld [vmem:[#allocation19 + $0x18] sm:$0xff] }
 0x279   :  { %vm953_vm3 = vmor %vm951_vm1, %vm952_vm0  ;;  %v939_v61 = vor.u32 1.1754944e-38, %v938_v52  ;;  %vm937_vm6 = vcmp.eq.f32.partialorder %v936_v55, 8.507059e+37  ;;  %1227 = vmatpush.bf16.msrb.mxu3 %v1736_v39 }
 0x27a   :  { %v948_v40 = vsub.f32 1.0, %v947_v31 }
 0x27c   :  { %v949_v44 = vmul.f32 %v1765_v24, %v948_v40 }
 0x27d   :  { %v1767_v46 = vpop.eup %1766  ;;  %1228 = vmatpush.bf16.msrb.mxu3 %v1735_v41 }
 0x27e   :  { %v928_v47 = vmul.f32 %v1767_v46, %v926_v23  ;;  %v950_v48 = vadd.f32 %v1765_v24, %v949_v44  ;;  %vm933_vm2 = vweird.f32 %v1767_v46  ;;  %v1769_v22 = vpop.eup %1768 }
 0x27f   :  { %vm934_vm5 = vmor %vm932_vm4, %vm933_vm2  ;;  %v1129_v25 = vmul.f32 128.0, %v1769_v22  ;;  %vm1133_vm8 = vweird.f32 %v1769_v22 }
 0x280   :  { %v929_v49 = vsub.f32 1.0, %v928_v47  ;;  %v954_v57 = vsel %vm953_vm3, %v1765_v24, %v950_v48  ;;  %v1153_v47 = vperm.slane %v2246_v9, 4 }
 0x281   :  { %v959_v0 = vsel %vm956_vm7, %v958_v60, %v954_v57  ;;  %v1130_v26 = vsub.f32 1.0, %v1129_v25  ;;  %1229 = vmatpush.bf16.msrb.mxu3 %v1734_v42 }
 0x282   :  { %v930_v54 = vmul.f32 %v1767_v46, %v929_v49 }
 0x283   :  { %v1131_v27 = vmul.f32 %v1769_v22, %v1130_v26 }
 0x284   :  { %v931_v56 = vadd.f32 %v1767_v46, %v930_v54  ;;  %v1174_v54 = vperm.slane %v2246_v9, 6 }
 0x285   :  { %v1132_v28 = vadd.f32 %v1769_v22, %v1131_v27  ;;  %1230 = vmatpush.bf16.msrb.mxu3 %v1733_v43 }
 0x286   :  { %v935_v62 = vsel %vm934_vm5, %v1767_v46, %v931_v56 }
 0x287   :  { %v940_v63 = vsel %vm937_vm6, %v939_v61, %v935_v62  ;;  %v1134_v29 = vsel %vm1133_vm8, %v1769_v22, %v1132_v28 }
 0x288   :  { %v961_v1 = vadd.f32 %v959_v0, %v940_v63 }
 0x28a   :  { %v962_v2 = vmul.f32 0.5, %v961_v1 }
 0x28c   :  { %v964_v3 = vmul.f32 %v963_v19, %v962_v2 }
 0x28e   :  { %v965_v4 = vadd.f32 %v964_v3, %v2266_v15 }
 0x290   :  { %v966_v5 = vpack.c.bf16 %v965_v4, %v965_v4 }
 0x292   :  { %1040 = vmatmul.bf16.vlgmr.msrb.gmra.mxu1 %v966_v5 }
 0x30f   :  { %v1041_v10 = vpop.f32.mrf.mxu1 }
 0x310   :  { %v1042_v11 = vadd.f32 %v1041_v10, %v983_v8 }
 0x312   :  { %v1045_v12 = vmax.f32 %v1042_v11, 0.0 }
 0x314   :  { %v1046_v13 = vpack.c.bf16 %v1045_v12, %v1045_v12 }
 0x316   :  { %1120 = vmatmul.bf16.vlgmr.msrb.gmra.mxu2 %v1046_v13 }
 0x317   :  { %v1043_v14 = vpop.f32.mrf.mxu1 }
 0x399   :  { %v1121_v59 = vpop.f32.mrf.mxu2 }
 0x39a   :  { %v1122_v18 = vadd.f32 %v1121_v59, %v1063_v16 }
 0x39c   :  { %v1125_v19 = vadd.f32 %v1122_v18, %v1045_v12 }
 0x39e   :  { %1126 = vadd.xlane.f32.xlu0 %v1125_v19 }
 0x3a1   :  { %v1123_v15 = vpop.f32.mrf.mxu2 }
 0x411   :  { %v1127_v30 = vpop.xlane.xlu0 %1126 }
 0x412   :  { %v1135_v32 = vmul.f32 %v1134_v29, %v1127_v30 }
 0x414   :  { %v1136_v33 = vsub.f32 %v1125_v19, %v1135_v32 }
 0x416   :  { %v1137_v34 = vmul.f32 %v1136_v33, %v1136_v33 }
 0x418   :  { %1138 = vadd.xlane.f32.xlu0 %v1137_v34 }
 0x48b   :  { %v1139_v17 = vpop.xlane.xlu0 %1138 }
 0x48c   :  { %v1140_v23 = vmul.f32 %v1139_v17, %v1134_v29 }
 0x48e   :  { %v1141_v24 = vadd.f32 1e-05, %v1140_v23 }
 0x490   :  { %1770 = vrsqrt.f32 %v1141_v24  ;;  %vm1148_vm10 = vweird.f32 %v1141_v24 }
 0x496   :  { %v1771_v31 = vpop.eup %1770 }
 0x497   :  { %v1143_v35 = vmul.f32 %v1771_v31, %v1141_v24  ;;  %vm1149_vm9 = vweird.f32 %v1771_v31 }
 0x498   :  { %vm1150_vm11 = vmor %vm1148_vm10, %vm1149_vm9 }
 0x499   :  { %v1144_v40 = vmul.f32 %v1771_v31, %v1143_v35 }
 0x49b   :  { %v1145_v44 = vmul.f32 0.5, %v1144_v40 }
 0x49d   :  { %v1146_v45 = vsub.f32 1.5, %v1145_v44 }
 0x49f   :  { %v1147_v46 = vmul.f32 %v1771_v31, %v1146_v45 }
 0x4a1   :  { %v1151_v48 = vsel %vm1150_vm11, %v1771_v31, %v1147_v46 }
 0x4a2   :  { %v1152_v49 = vmul.f32 %v1151_v48, %v1136_v33 }
 0x4a4   :  { %v1154_v51 = vmul.f32 %v1153_v47, %v1152_v49 }
 0x4a6   :  { %v1156_v52 = vadd.f32 %v1155_v50, %v1154_v51 }
 0x4a8   :  { %v1157_v53 = vpack.c.bf16 %v1156_v52, %v1156_v52 }
 0x4aa   :  { %1231 = vmatmul.bf16.vlgmr.msrb.gmra.mxu3 %v1157_v53 }
 0x52d   :  { %v1232_v55 = vpop.f32.mrf.mxu3 }
 0x52e   :  { %v1233_v56 = vadd.f32 %v1232_v55, %v1174_v54 }
 0x530   :  { %1236 = vst [vmem:[#allocation20] sm:$0xff] %v1233_v56 }
 0x531   :  { %1247 = dma.vmem_to_hbm [thread:$0]  %s1243_s27, 128, %s1245_s0, [#allocation4]  }
 0x535   :  { %v1234_v57 = vpop.f32.mrf.mxu3 }
 0x536   :  { %2072 = dma.done.wait [#allocation4], 128  }
 0x537   :  { %2073 = vsyncadd [#allocation4], 4294967168 }
 0x538   :  { %1252 = vsyncpa [#allocation3], 1 }
 0x539   :  { %1253 = vsyncpa [#allocation6], 1 }
 0x53a   :  { %1254 = vsyncpa [#allocation9], 1 }
 0x53b   :  { %1255 = vsyncpa [#allocation12], 1 }
 0x53c   :  { %1256 = vsyncpa [#allocation15], 1 }
 0x53d   :  { %1257 = vsyncpa [#allocation18], 1 }
 0x53e   :  { %1258 = vsyncpa [#allocation4], 1 }

</bundles_post_ra>
